<compile_context>
chip_gen: v5e
topology: v5e:2x2
jax: 0.10.0
libtpu: 0.0.40
codegen_flags: <defaults>
</compile_context>

<pallas_src>
from functools import partial

import numpy as np
import jax
import jax.numpy as jnp
from jax.experimental import pallas as pl
from jax.experimental.pallas import tpu as pltpu


def _round_up(v, m):
    return -(-v // m) * m


# ----------------------------------------------------------------------------
# Pallas kernel: fused Conv1d + bias + ReLU + MaxPool1d(2) + Flatten + Linear
# ----------------------------------------------------------------------------
def _cnn1d_fused_kernel(x_ref, weo_ref, bc_ref, wfc_ref, bfc_ref, o_ref):
    """
    x_ref  : (TB, T*C_in)            f32 activations (row index = t*C_in + c)
    weo_ref: (T*C_in, 2*N_pad)       bf16 Toeplitz conv weight, [even | odd]
    bc_ref : (1, N_pad)              f32 conv bias tiled per pooled position
    wfc_ref: (N_pad, C_pad)          bf16 fc weight, rows in (j, f) order
    bfc_ref: (1, C_pad)              f32 fc bias (zero-padded)
    o_ref  : (TB, C_pad)             f32 logits (padded lanes are zero)
    """
    n_pad = weo_ref.shape[1] // 2

    xb = x_ref[...].astype(jnp.bfloat16)                      # bf16 MXU operand
    g = jnp.dot(xb, weo_ref[...], preferred_element_type=jnp.float32)  # (TB, 2*N_pad)
    ge = g[:, :n_pad] + bc_ref[...]                           # even conv positions
    go = g[:, n_pad:] + bc_ref[...]                           # odd  conv positions
    # relu(maxpool2(conv)) == max(max(conv_even, conv_odd), 0)  (f32 elementwise)
    pooled = jnp.maximum(jnp.maximum(ge, go), 0.0)            # (TB, N_pad)

    out = jnp.dot(pooled.astype(jnp.bfloat16), wfc_ref[...],
                  preferred_element_type=jnp.float32) + bfc_ref[...]
    o_ref[...] = out.astype(o_ref.dtype)


# ----------------------------------------------------------------------------
# Forward wrapper (batch-gridded pallas_call)
# ----------------------------------------------------------------------------
@partial(jax.jit, static_argnames=("num_classes",))
def cnn1d_forward(x, kp, *, num_classes):
    """x: (B, seq_len, input_size) batch-first, like the PyTorch module."""
    B = x.shape[0]
    x2 = x.reshape(B, -1).astype(jnp.float32)     # (B, T*C_in); idx = t*C_in + c
    k_in = x2.shape[1]
    n_pad = kp["w_eo"].shape[1] // 2
    c_pad = kp["w_fc"].shape[1]

    # Batch tiling: constant per-step VMEM for any B; >=2 steps when B is big
    # enough lets the "parallel" axis shard across v7x's two TensorCores.
    TB = min(512, _round_up(B, 8))
    B_pad = _round_up(B, TB)
    if B_pad != B:
        x2 = jnp.pad(x2, ((0, B_pad - B), (0, 0)))

    flops = 2 * B_pad * k_in * (2 * n_pad) + 2 * B_pad * n_pad * c_pad
    bytes_accessed = (x2.size * 4 + kp["w_eo"].size * 2 + kp["b_conv"].size * 4
                      + kp["w_fc"].size * 2 + kp["b_fc"].size * 4
                      + B_pad * c_pad * 4)

    out = pl.pallas_call(
        _cnn1d_fused_kernel,
        out_shape=jax.ShapeDtypeStruct((B_pad, c_pad), jnp.float32),
        grid_spec=pltpu.PrefetchScalarGridSpec(
            num_scalar_prefetch=0,
            grid=(B_pad // TB,),
            in_specs=[
                pl.BlockSpec((TB, k_in), lambda i: (i, 0)),
                pl.BlockSpec(kp["w_eo"].shape, lambda i: (0, 0)),
                pl.BlockSpec(kp["b_conv"].shape, lambda i: (0, 0)),
                pl.BlockSpec(kp["w_fc"].shape, lambda i: (0, 0)),
                pl.BlockSpec(kp["b_fc"].shape, lambda i: (0, 0)),
            ],
            out_specs=pl.BlockSpec((TB, c_pad), lambda i: (i, 0)),
        ),
        compiler_params=pltpu.CompilerParams(
            dimension_semantics=("parallel",),
            vmem_limit_bytes=32 * 1024 * 1024,
        ),
        cost_estimate=pl.CostEstimate(
            flops=int(flops), transcendentals=0,
            bytes_accessed=int(bytes_accessed)),
    )(x2, kp["w_eo"], kp["b_conv"], kp["w_fc"], kp["b_fc"])

    return out[:B, :num_classes]


# ----------------------------------------------------------------------------
# One-time weight preparation (PyTorch layouts -> kernel layouts)
# ----------------------------------------------------------------------------
def prepare_kernel_params(params, seq_len):
    w, bc = params["conv_w"], params["conv_b"]      # (F, C_in, K), (F,)
    wf, bf = params["fc_w"], params["fc_b"]         # (C, F*L_pool), (C,)
    F, C_in, K = w.shape
    T = seq_len
    L_out = T - K + 1
    L_pool = L_out // 2
    C_cls = wf.shape[0]
    assert wf.shape[1] == L_pool * F, "fc in_features requires seq_len == input_size"

    N = L_pool * F
    N_pad = _round_up(N, 128)        # 224 -> 256: lane-dense intermediates
    C_pad = _round_up(C_cls, 128)    # 10  -> 128: lane-dense logits store
    K_in = T * C_in

    w_np = np.asarray(w, np.float32)
    # dense[t, c, parity, j*F + f] = w[f, c, k]  where t = 2*j + parity + k
    dense = np.zeros((T, C_in, 2, N_pad), np.float32)
    for parity in range(2):
        for j in range(L_pool):
            for k in range(K):
                t = 2 * j + parity + k
                dense[t, :, parity, j * F:(j + 1) * F] = w_np[:, :, k].T
    # rows: t*C_in + c ; cols: [even (N_pad) | odd (N_pad)], single GEMM RHS.
    w_eo = dense.reshape(K_in, 2 * N_pad)

    b_conv = np.zeros((1, N_pad), np.float32)
    b_conv[0, :N] = np.tile(np.asarray(bc, np.float32), L_pool)  # [j*F+f] -> bc[f]

    # PyTorch Flatten of (B, F, L_pool) uses index f*L_pool + j; kernel columns
    # are ordered j*F + f, so reorder the fc weight rows accordingly (+ pad).
    wf_np = np.asarray(wf, np.float32).reshape(C_cls, F, L_pool)
    w_fc = np.zeros((N_pad, C_pad), np.float32)
    w_fc[:N, :C_cls] = wf_np.transpose(2, 1, 0).reshape(N, C_cls)

    b_fc = np.zeros((1, C_pad), np.float32)
    b_fc[0, :C_cls] = np.asarray(bf, np.float32)

    return {
        "w_eo": jnp.asarray(w_eo, jnp.bfloat16),     # bf16: halves the big DMA
        "b_conv": jnp.asarray(b_conv, jnp.float32),
        "w_fc": jnp.asarray(w_fc, jnp.bfloat16),
        "b_fc": jnp.asarray(b_fc, jnp.float32),
    }


# ----------------------------------------------------------------------------
# Deterministic parameter init (same shapes as nn.Conv1d / nn.Linear)
# ----------------------------------------------------------------------------
def init_params(key, input_size, num_classes, num_filters=32, kernel_size=3):
    k1, k2, k3, k4 = jax.random.split(key, 4)
    conv_bound = (input_size * kernel_size) ** -0.5
    conv_w = jax.random.uniform(k1, (num_filters, input_size, kernel_size),
                                jnp.float32, -conv_bound, conv_bound)
    conv_b = jax.random.uniform(k2, (num_filters,), jnp.float32,
                                -conv_bound, conv_bound)
    pool_out = (input_size - kernel_size + 1) // 2
    fc_in = pool_out * num_filters
    fc_bound = fc_in ** -0.5
    fc_w = jax.random.uniform(k3, (num_classes, fc_in), jnp.float32,
                              -fc_bound, fc_bound)
    fc_b = jax.random.uniform(k4, (num_classes,), jnp.float32,
                              -fc_bound, fc_bound)
    return {"conv_w": conv_w, "conv_b": conv_b, "fc_w": fc_w, "fc_b": fc_b}


# ----------------------------------------------------------------------------
# Pure-JAX reference (mirrors the PyTorch forward) for a correctness check
# ----------------------------------------------------------------------------
def reference_forward(x, params):
    w, bc = params["conv_w"], params["conv_b"]
    wf, bf = params["fc_w"], params["fc_b"]
    xp = jnp.transpose(x, (0, 2, 1))                 # permute(0, 2, 1): (B, C_in, T)
    B, C_in, T = xp.shape
    F, _, K = w.shape
    L_out = T - K + 1
    conv = jnp.stack(
        [jnp.einsum("bck,fck->bf", xp[:, :, l:l + K], w,
                    precision=jax.lax.Precision.HIGHEST)
         for l in range(L_out)],
        axis=-1) + bc[None, :, None]                 # (B, F, L_out)
    act = jnp.maximum(conv, 0.0)                     # ReLU
    L_pool = L_out // 2
    pooled = jnp.maximum(act[:, :, 0:2 * L_pool:2],  # MaxPool1d(2)
                         act[:, :, 1:2 * L_pool:2])  # (B, F, L_pool)
    flat = pooled.reshape(B, F * L_pool)             # Flatten (channel-major)
    return jnp.dot(flat, wf.T, precision=jax.lax.Precision.HIGHEST) + bf


if __name__ == "__main__":
    batch = 2
    input_size = 16       # Conv1d in_channels; module requires seq_len == input_size
    seq_len = 16
    num_classes = 10
    num_filters = 32
    kernel_size = 3

    key = jax.random.PRNGKey(0)
    kx, kp = jax.random.split(key)
    x = jax.random.normal(kx, (batch, seq_len, input_size), jnp.float32)
    params = init_params(kp, input_size, num_classes, num_filters, kernel_size)
    kparams = prepare_kernel_params(params, seq_len)

    out = jax.block_until_ready(cnn1d_forward(x, kparams, num_classes=num_classes))
    ref = reference_forward(x, params)

    assert out.shape == (batch, num_classes)
    # bf16 weight storage / MXU operands -> tolerance at bf16 precision level.
    assert jnp.allclose(out, ref, atol=3e-2, rtol=3e-2), "mismatch vs reference"

    print("KERNEL_OK")
</pallas_src>

<mosaic_0001>
module attributes {stable_mosaic.version = 11 : i64} {
  func.func @_cnn1d_fused_kernel(%arg0: i32, %arg1: memref<8x256xf32, #tpu.memory_space<vmem>>, %arg2: memref<256x512xbf16, #tpu.memory_space<vmem>>, %arg3: memref<1x256xf32, #tpu.memory_space<vmem>>, %arg4: memref<256x128xbf16, #tpu.memory_space<vmem>>, %arg5: memref<1x128xf32, #tpu.memory_space<vmem>>, %arg6: memref<8x128xf32, #tpu.memory_space<vmem>>) attributes {dimension_semantics = [#tpu.dimension_semantics<parallel>], iteration_bounds = array<i64: 1>, scalar_prefetch = 0 : i64, scratch_operands = 0 : i64, tpu.core_type = #tpu.core_type<tc>, window_params = [{transform_indices = @transform_0, window_bounds = array<i64: 8, 256>}, {pipeline_mode = #tpu.pipeline_mode<synchronous>, transform_indices = @transform_1, window_bounds = array<i64: 256, 512>}, {pipeline_mode = #tpu.pipeline_mode<synchronous>, transform_indices = @transform_2, window_bounds = array<i64: 1, 256>}, {pipeline_mode = #tpu.pipeline_mode<synchronous>, transform_indices = @transform_3, window_bounds = array<i64: 256, 128>}, {pipeline_mode = #tpu.pipeline_mode<synchronous>, transform_indices = @transform_4, window_bounds = array<i64: 1, 128>}, {transform_indices = @transform_5, window_bounds = array<i64: 8, 128>}]} {
    %c0 = arith.constant 0 : index
    %c0_0 = arith.constant 0 : index
    %0 = vector.load %arg1[%c0, %c0_0] : memref<8x256xf32, #tpu.memory_space<vmem>>, vector<8x256xf32>
    %1 = arith.truncf %0 : vector<8x256xf32> to vector<8x256xbf16>
    %c0_1 = arith.constant 0 : index
    %c0_2 = arith.constant 0 : index
    %2 = vector.load %arg2[%c0_1, %c0_2] : memref<256x512xbf16, #tpu.memory_space<vmem>>, vector<256x512xbf16>
    %cst = arith.constant dense<0.000000e+00> : vector<8x512xf32>
    %3 = tpu.matmul %1, %2, %cst {dimension_numbers = #tpu.dot_dimension_numbers<[1], [0], [0], [1], [0, 0, 1, 1], [], []>} : vector<8x256xbf16>, vector<256x512xbf16>, vector<8x512xf32> -> vector<8x512xf32>
    %4 = vector.extract_strided_slice %3 {offsets = [0, 0], sizes = [8, 256], strides = [1, 1]} : vector<8x512xf32> to vector<8x256xf32>
    %c0_3 = arith.constant 0 : index
    %c0_4 = arith.constant 0 : index
    %5 = vector.load %arg3[%c0_3, %c0_4] : memref<1x256xf32, #tpu.memory_space<vmem>>, vector<1x256xf32>
    %6 = vector.broadcast %5 : vector<1x256xf32> to vector<8x256xf32>
    %7 = arith.addf %4, %6 : vector<8x256xf32>
    %8 = vector.extract_strided_slice %3 {offsets = [0, 256], sizes = [8, 256], strides = [1, 1]} : vector<8x512xf32> to vector<8x256xf32>
    %c0_5 = arith.constant 0 : index
    %c0_6 = arith.constant 0 : index
    %9 = vector.load %arg3[%c0_5, %c0_6] : memref<1x256xf32, #tpu.memory_space<vmem>>, vector<1x256xf32>
    %10 = vector.broadcast %9 : vector<1x256xf32> to vector<8x256xf32>
    %11 = arith.addf %8, %10 : vector<8x256xf32>
    %12 = arith.maximumf %7, %11 : vector<8x256xf32>
    %cst_7 = arith.constant 0.000000e+00 : f32
    %13 = vector.broadcast %cst_7 : f32 to vector<8x256xf32>
    %14 = arith.maximumf %12, %13 : vector<8x256xf32>
    %15 = arith.truncf %14 : vector<8x256xf32> to vector<8x256xbf16>
    %c0_8 = arith.constant 0 : index
    %c0_9 = arith.constant 0 : index
    %16 = vector.load %arg4[%c0_8, %c0_9] : memref<256x128xbf16, #tpu.memory_space<vmem>>, vector<256x128xbf16>
    %cst_10 = arith.constant dense<0.000000e+00> : vector<8x128xf32>
    %17 = tpu.matmul %15, %16, %cst_10 {dimension_numbers = #tpu.dot_dimension_numbers<[1], [0], [0], [1], [0, 0, 1, 1], [], []>} : vector<8x256xbf16>, vector<256x128xbf16>, vector<8x128xf32> -> vector<8x128xf32>
    %c0_11 = arith.constant 0 : index
    %c0_12 = arith.constant 0 : index
    %18 = vector.load %arg5[%c0_11, %c0_12] : memref<1x128xf32, #tpu.memory_space<vmem>>, vector<1x128xf32>
    %19 = vector.broadcast %18 : vector<1x128xf32> to vector<8x128xf32>
    %20 = arith.addf %17, %19 : vector<8x128xf32>
    %c0_13 = arith.constant 0 : index
    %c0_14 = arith.constant 0 : index
    %21 = vector.load %arg6[%c0_13, %c0_14] : memref<8x128xf32, #tpu.memory_space<vmem>>, vector<8x128xf32>
    tpu.vector_store %arg6[%c0_13, %c0_14], %20 {strides = array<i32>} : memref<8x128xf32, #tpu.memory_space<vmem>>, vector<8x128xf32>,
    return
  }
  func.func @transform_0(%arg0: i32) -> (i32, i32) {
    %c0_i32 = arith.constant 0 : i32
    %c0_i32_0 = arith.constant 0 : i32
    return %arg0, %c0_i32 : i32, i32
  }
  func.func @transform_1(%arg0: i32) -> (i32, i32) {
    %c0_i32 = arith.constant 0 : i32
    %c0_i32_0 = arith.constant 0 : i32
    %c0_i32_1 = arith.constant 0 : i32
    return %c0_i32, %c0_i32_0 : i32, i32
  }
  func.func @transform_2(%arg0: i32) -> (i32, i32) {
    %c0_i32 = arith.constant 0 : i32
    %c0_i32_0 = arith.constant 0 : i32
    %c0_i32_1 = arith.constant 0 : i32
    return %c0_i32, %c0_i32_0 : i32, i32
  }
  func.func @transform_3(%arg0: i32) -> (i32, i32) {
    %c0_i32 = arith.constant 0 : i32
    %c0_i32_0 = arith.constant 0 : i32
    %c0_i32_1 = arith.constant 0 : i32
    return %c0_i32, %c0_i32_0 : i32, i32
  }
  func.func @transform_4(%arg0: i32) -> (i32, i32) {
    %c0_i32 = arith.constant 0 : i32
    %c0_i32_0 = arith.constant 0 : i32
    %c0_i32_1 = arith.constant 0 : i32
    return %c0_i32, %c0_i32_0 : i32, i32
  }
  func.func @transform_5(%arg0: i32) -> (i32, i32) {
    %c0_i32 = arith.constant 0 : i32
    %c0_i32_0 = arith.constant 0 : i32
    return %arg0, %c0_i32 : i32, i32
  }
}

</mosaic_0001>

<bundles_post_ra>
// kernel: cnn1d_forward.1
= control target key start
LH: loop header
LB: loop body
LE: loop exit
PB: predicated region body
PF: predicated region fallthrough
CT: control target
= control target key end

     0   :  { %10 = vsyncpa [#allocation3], 0  ;;  %s1253_s0 = inlined_call_operand.vmem [shape: f32[8,256], index: 0, kind: input, shape index: {}]   ;;  %s1254_s1 = inlined_call_operand.hbm [shape: bf16[256,512], index: 1, kind: input, shape index: {}]   ;;  %s1255_s2 = inlined_call_operand.vmem [shape: f32[1,256], index: 2, kind: input, shape index: {}]   ;;  %s1256_s3 = inlined_call_operand.hbm [shape: bf16[256,128], index: 3, kind: input, shape index: {}]   ;;  %s1257_s4 = inlined_call_operand.vmem [shape: f32[1,128], index: 4, kind: input, shape index: {}]   ;;  %s1258_s5 = inlined_call_operand.vmem [shape: f32[8,128], index: 5, kind: output, shape index: {}]  }
   0x1   :  { %s18_s20 = sshll.u32 %s1254_s1, 4  ;;  %s19_s20 = int_to_ptr.hbm [resolvable:$true] %s18_s20 }
   0x2   :  { %11 = vsyncpa [#allocation5], 0  ;;  %s1184_s21 = smov [#allocation2]   ;;  %s33_s25 = sshll.u32 %s1256_s3, 4  ;;  %s34_s25 = int_to_ptr.hbm [resolvable:$true] %s33_s25 }
   0x3   :  { %s20_s22 = sshll.u32 %s1184_s21, 4  ;;  %s1185_s26 = smov 256   ;;  %s21_s22 = int_to_ptr.vmem [resolvable:$true] %s20_s22 }
   0x4   :  { %s1186_s27 = smov 16   ;;  %s1187_s28 = smov [#allocation4]  }
   0x5   :  { %26 = dma.hbm_to_vmem [thread:$0]  %s19_s20, 8192, %s21_s22, [#allocation3], %s1185_s26, %s1185_s26, %s1186_s27  }
   0x6   :  { %s35_s29 = sshll.u32 %s1187_s28, 4  ;;  %s1188_s30 = smov 64   ;;  %s36_s29 = int_to_ptr.vmem [resolvable:$true] %s35_s29 }
   0x7   :  { %s1189_s6 = smov 4  }
   0x8   :  { %41 = dma.hbm_to_vmem [thread:$0]  %s34_s25, 2048, %s36_s29, [#allocation5], %s1188_s30, %s1188_s30, %s1189_s6  }
   0x9   :  { %1180 = dma.done.wait [#allocation3], 8192  }
   0xa   :  { %1181 = vsyncadd [#allocation3], 4294959104 }
   0xb   :  { %1182 = dma.done.wait [#allocation5], 2048  }
   0xc   :  { %1183 = vsyncadd [#allocation5], 4294965248  ;;  %v839_v0 = vld [vmem:[#allocation2 + $0xe0] sm:$0xf]  ;;  %v1075_v1 = vld [vmem:[#allocation2 + $0xec] sm:$0xf0] }
   0xd   :  { %v967_v2 = vld [vmem:[#allocation2 + $0x1e0] sm:$0xf]  ;;  %v840_v3 = vor.u32 %v1075_v1, %v839_v0  ;;  %v1107_v4 = vld [vmem:[#allocation2 + $0x1ec] sm:$0xf0]  ;;  %v1073_v5 = vld [vmem:[#allocation2 + $0xe4] sm:$0xf] }
   0xe   :  { %v841_v6 = vld [vmem:[#allocation2 + $0xf0] sm:$0xf0]  ;;  %v968_v7 = vor.u32 %v1107_v4, %v967_v2  ;;  %v1105_v9 = vld [vmem:[#allocation2 + $0x1e4] sm:$0xf]  ;;  %v823_v11 = vld [vmem:[#allocation2 + $0xc0] sm:$0xf] }
   0xf   :  { %v844_v8 = vor.u32 %v1073_v5, %v841_v6  ;;  %v969_v10 = vld [vmem:[#allocation2 + $0x1f0] sm:$0xf0]  ;;  %440 = vmatpush.bf16.msra.mxu0 %v840_v3  ;;  %v1071_v13 = vld [vmem:[#allocation2 + $0xcc] sm:$0xf0]  ;;  %v951_v14 = vld [vmem:[#allocation2 + $0x1c0] sm:$0xf] }
  0x10   :  { %v972_v12 = vor.u32 %v1105_v9, %v969_v10  ;;  %v1103_v15 = vld [vmem:[#allocation2 + $0x1cc] sm:$0xf0]  ;;  %453 = vmatpush.bf16.msra.mxu1 %v968_v7  ;;  %v824_v16 = vor.u32 %v1071_v13, %v823_v11  ;;  %v1069_v18 = vld [vmem:[#allocation2 + $0xc4] sm:$0xf]  ;;  %v825_v19 = vld [vmem:[#allocation2 + $0xd0] sm:$0xf0] }
  0x11   :  { %466 = vmatpush.bf16.msra.mxu2 %v844_v8  ;;  %v952_v17 = vor.u32 %v1103_v15, %v951_v14  ;;  %v1101_v20 = vld [vmem:[#allocation2 + $0x1c4] sm:$0xf]  ;;  %v828_v21 = vor.u32 %v1069_v18, %v825_v19  ;;  %v953_v22 = vld [vmem:[#allocation2 + $0x1d0] sm:$0xf0]  ;;  %v807_v23 = vld [vmem:[#allocation2 + $0xa0] sm:$0xf] }
  0x12   :  { %479 = vmatpush.bf16.msra.mxu3 %v972_v12  ;;  %v1067_v24 = vld [vmem:[#allocation2 + $0xac] sm:$0xf0]  ;;  %v956_v25 = vor.u32 %v1101_v20, %v953_v22  ;;  %v935_v26 = vld [vmem:[#allocation2 + $0x1a0] sm:$0xf]  ;;  %v1065_v28 = vld [vmem:[#allocation2 + $0xa4] sm:$0xf] }
  0x13   :  { %v1099_v27 = vld [vmem:[#allocation2 + $0x1ac] sm:$0xf0]  ;;  %441 = vmatpush.bf16.msra.mxu0 %v824_v16  ;;  %v808_v29 = vor.u32 %v1067_v24, %v807_v23  ;;  %v809_v30 = vld [vmem:[#allocation2 + $0xb0] sm:$0xf0]  ;;  %v1097_v31 = vld [vmem:[#allocation2 + $0x1a4] sm:$0xf] }
  0x14   :  { %v937_v32 = vld [vmem:[#allocation2 + $0x1b0] sm:$0xf0]  ;;  %454 = vmatpush.bf16.msra.mxu1 %v952_v17  ;;  %v936_v33 = vor.u32 %v1099_v27, %v935_v26  ;;  %v812_v34 = vor.u32 %v1065_v28, %v809_v30  ;;  %v791_v35 = vld [vmem:[#allocation2 + $0x80] sm:$0xf]  ;;  %v1063_v36 = vld [vmem:[#allocation2 + $0x8c] sm:$0xf0] }
  0x15   :  { %467 = vmatpush.bf16.msra.mxu2 %v828_v21  ;;  %v919_v37 = vld [vmem:[#allocation2 + $0x180] sm:$0xf]  ;;  %v940_v38 = vor.u32 %v1097_v31, %v937_v32  ;;  %v1095_v39 = vld [vmem:[#allocation2 + $0x18c] sm:$0xf0]  ;;  %v1061_v40 = vld [vmem:[#allocation2 + $0x84] sm:$0xf]  ;;  %v792_v44 = vor.u32 %v1063_v36, %v791_v35 }
  0x16   :  { %480 = vmatpush.bf16.msra.mxu3 %v956_v25  ;;  %v793_v41 = vld [vmem:[#allocation2 + $0x90] sm:$0xf0]  ;;  %v1093_v42 = vld [vmem:[#allocation2 + $0x184] sm:$0xf]  ;;  %v920_v45 = vor.u32 %v1095_v39, %v919_v37  ;;  %v775_v47 = vld [vmem:[#allocation2 + $0x60] sm:$0xf] }
  0x17   :  { %v921_v43 = vld [vmem:[#allocation2 + $0x190] sm:$0xf0]  ;;  %442 = vmatpush.bf16.msra.mxu0 %v808_v29  ;;  %v796_v46 = vor.u32 %v1061_v40, %v793_v41  ;;  %v1059_v48 = vld [vmem:[#allocation2 + $0x6c] sm:$0xf0]  ;;  %v903_v49 = vld [vmem:[#allocation2 + $0x160] sm:$0xf] }
  0x18   :  { %455 = vmatpush.bf16.msra.mxu1 %v936_v33  ;;  %v924_v50 = vor.u32 %v1093_v42, %v921_v43  ;;  %v1091_v51 = vld [vmem:[#allocation2 + $0x16c] sm:$0xf0]  ;;  %v1057_v52 = vld [vmem:[#allocation2 + $0x64] sm:$0xf]  ;;  %v777_v53 = vld [vmem:[#allocation2 + $0x70] sm:$0xf0]  ;;  %v776_v56 = vor.u32 %v1059_v48, %v775_v47 }
  0x19   :  { %468 = vmatpush.bf16.msra.mxu2 %v812_v34  ;;  %v1089_v54 = vld [vmem:[#allocation2 + $0x164] sm:$0xf]  ;;  %v905_v55 = vld [vmem:[#allocation2 + $0x170] sm:$0xf0]  ;;  %v904_v57 = vor.u32 %v1091_v51, %v903_v49  ;;  %v780_v58 = vor.u32 %v1057_v52, %v777_v53  ;;  %v759_v59 = vld [vmem:[#allocation2 + $0x40] sm:$0xf] }
  0x1a   :  { %481 = vmatpush.bf16.msra.mxu3 %v940_v38  ;;  %v1055_v60 = vld [vmem:[#allocation2 + $0x4c] sm:$0xf0]  ;;  %v887_v61 = vld [vmem:[#allocation2 + $0x140] sm:$0xf]  ;;  %v908_v62 = vor.u32 %v1089_v54, %v905_v55  ;;  %v1053_v0 = vld [vmem:[#allocation2 + $0x44] sm:$0xf] }
  0x1b   :  { %443 = vmatpush.bf16.msra.mxu0 %v792_v44  ;;  %v1087_v63 = vld [vmem:[#allocation2 + $0x14c] sm:$0xf0]  ;;  %v761_v1 = vld [vmem:[#allocation2 + $0x50] sm:$0xf0]  ;;  %v1085_v2 = vld [vmem:[#allocation2 + $0x144] sm:$0xf]  ;;  %v760_v4 = vor.u32 %v1055_v60, %v759_v59 }
  0x1c   :  { %456 = vmatpush.bf16.msra.mxu1 %v920_v45  ;;  %v889_v3 = vld [vmem:[#allocation2 + $0x150] sm:$0xf0]  ;;  %v888_v5 = vor.u32 %v1087_v63, %v887_v61  ;;  %v764_v6 = vor.u32 %v1053_v0, %v761_v1  ;;  %v743_v7 = vld [vmem:[#allocation2 + $0x20] sm:$0xf]  ;;  %v1051_v8 = vld [vmem:[#allocation2 + $0x2c] sm:$0xf0] }
  0x1d   :  { %469 = vmatpush.bf16.msra.mxu2 %v796_v46  ;;  %v871_v9 = vld [vmem:[#allocation2 + $0x120] sm:$0xf]  ;;  %v892_v10 = vor.u32 %v1085_v2, %v889_v3  ;;  %v1083_v11 = vld [vmem:[#allocation2 + $0x12c] sm:$0xf0]  ;;  %v1049_v12 = vld [vmem:[#allocation2 + $0x24] sm:$0xf]  ;;  %v744_v16 = vor.u32 %v1051_v8, %v743_v7 }
  0x1e   :  { %482 = vmatpush.bf16.msra.mxu3 %v924_v50  ;;  %v745_v13 = vld [vmem:[#allocation2 + $0x30] sm:$0xf0]  ;;  %v1081_v14 = vld [vmem:[#allocation2 + $0x124] sm:$0xf]  ;;  %v727_v17 = vld [vmem:[#allocation2] sm:$0xf]  ;;  %v872_v19 = vor.u32 %v1083_v11, %v871_v9 }
  0x1f   :  { %444 = vmatpush.bf16.msra.mxu0 %v776_v56  ;;  %v873_v15 = vld [vmem:[#allocation2 + $0x130] sm:$0xf0]  ;;  %v1047_v18 = vld [vmem:[#allocation2 + $0xc] sm:$0xf0]  ;;  %v748_v20 = vor.u32 %v1049_v12, %v745_v13  ;;  %v855_v21 = vld [vmem:[#allocation2 + $0x100] sm:$0xf] }
  0x20   :  { %457 = vmatpush.bf16.msra.mxu1 %v904_v57  ;;  %v1079_v22 = vld [vmem:[#allocation2 + $0x10c] sm:$0xf0]  ;;  %v1045_v23 = vld [vmem:[#allocation2 + $0x4] sm:$0xf]  ;;  %v876_v24 = vor.u32 %v1081_v14, %v873_v15  ;;  %v729_v25 = vld [vmem:[#allocation2 + $0x10] sm:$0xf0]  ;;  %v728_v31 = vor.u32 %v1047_v18, %v727_v17 }
  0x21   :  { %470 = vmatpush.bf16.msra.mxu2 %v780_v58  ;;  %v1077_v26 = vld [vmem:[#allocation2 + $0x104] sm:$0xf]  ;;  %v857_v27 = vld [vmem:[#allocation2 + $0x110] sm:$0xf0]  ;;  %v847_v28 = vld [vmem:[#allocation2 + $0xe8] sm:$0xf]  ;;  %v856_v35 = vor.u32 %v1079_v22, %v855_v21  ;;  %v732_v36 = vor.u32 %v1045_v23, %v729_v25 }
  0x22   :  { %483 = vmatpush.bf16.msra.mxu3 %v908_v62  ;;  %v1076_v29 = vld [vmem:[#allocation2 + $0xf4] sm:$0xf0]  ;;  %v975_v30 = vld [vmem:[#allocation2 + $0x1e8] sm:$0xf]  ;;  %v1074_v33 = vld [vmem:[#allocation2 + $0xec] sm:$0xf]  ;;  %v860_v40 = vor.u32 %v1077_v26, %v857_v27 }
  0x23   :  { %445 = vmatpush.bf16.msra.mxu0 %v760_v4  ;;  %v1108_v32 = vld [vmem:[#allocation2 + $0x1f4] sm:$0xf0]  ;;  %v849_v34 = vld [vmem:[#allocation2 + $0xf8] sm:$0xf0]  ;;  %v1106_v37 = vld [vmem:[#allocation2 + $0x1ec] sm:$0xf]  ;;  %v848_v41 = vor.u32 %v1076_v29, %v847_v28 }
  0x24   :  { %458 = vmatpush.bf16.msra.mxu1 %v888_v5  ;;  %v977_v38 = vld [vmem:[#allocation2 + $0x1f8] sm:$0xf0]  ;;  %v52_v39 = vld [vmem:[%s1253_s0] sm:$0xff]  ;;  %v53_v42 = vld [vmem:[%s1253_s0 + $0x8] sm:$0xff]  ;;  %v976_v43 = vor.u32 %v1108_v32, %v975_v30  ;;  %v852_v44 = vor.u32 %v1074_v33, %v849_v34 }
  0x25   :  { %471 = vmatpush.bf16.msra.mxu2 %v764_v6  ;;  %v831_v45 = vld [vmem:[#allocation2 + $0xc8] sm:$0xf]  ;;  %v1072_v46 = vld [vmem:[#allocation2 + $0xd4] sm:$0xf0]  ;;  %v980_v48 = vor.u32 %v1106_v37, %v977_v38  ;;  %v1070_v50 = vld [vmem:[#allocation2 + $0xcc] sm:$0xf]  ;;  %v1232_v52 = vpack.c.bf16 %v52_v39, %v52_v39  ;;  %v1234_v55 = vpack.c.bf16 %v53_v42, %v53_v42 }
  0x26   :  { %484 = vmatpush.bf16.msra.mxu3 %v892_v10  ;;  %v959_v47 = vld [vmem:[#allocation2 + $0x1c8] sm:$0xf]  ;;  %v1104_v49 = vld [vmem:[#allocation2 + $0x1d4] sm:$0xf0]  ;;  %v833_v51 = vld [vmem:[#allocation2 + $0xd8] sm:$0xf0]  ;;  %v832_v56 = vor.u32 %v1072_v46, %v831_v45 }
  0x27   :  { %446 = vmatpush.bf16.msra.mxu0 %v744_v16  ;;  %v1102_v53 = vld [vmem:[#allocation2 + $0x1cc] sm:$0xf]  ;;  %v961_v54 = vld [vmem:[#allocation2 + $0x1d8] sm:$0xf0]  ;;  %v960_v57 = vor.u32 %v1104_v49, %v959_v47  ;;  %v836_v58 = vor.u32 %v1070_v50, %v833_v51  ;;  %v815_v59 = vld [vmem:[#allocation2 + $0xa8] sm:$0xf] }
  0x28   :  { %459 = vmatpush.bf16.msra.mxu1 %v872_v19  ;;  %v1068_v60 = vld [vmem:[#allocation2 + $0xb4] sm:$0xf0]  ;;  %v943_v61 = vld [vmem:[#allocation2 + $0x1a8] sm:$0xf]  ;;  %v964_v62 = vor.u32 %v1102_v53, %v961_v54  ;;  %v1066_v0 = vld [vmem:[#allocation2 + $0xac] sm:$0xf] }
  0x29   :  { %472 = vmatpush.bf16.msra.mxu2 %v748_v20  ;;  %v1100_v63 = vld [vmem:[#allocation2 + $0x1b4] sm:$0xf0]  ;;  %v817_v1 = vld [vmem:[#allocation2 + $0xb8] sm:$0xf0]  ;;  %v1098_v2 = vld [vmem:[#allocation2 + $0x1ac] sm:$0xf]  ;;  %v816_v4 = vor.u32 %v1068_v60, %v815_v59 }
  0x2a   :  { %485 = vmatpush.bf16.msra.mxu3 %v876_v24  ;;  %v945_v3 = vld [vmem:[#allocation2 + $0x1b8] sm:$0xf0]  ;;  %v944_v5 = vor.u32 %v1100_v63, %v943_v61  ;;  %v820_v6 = vor.u32 %v1066_v0, %v817_v1  ;;  %v799_v7 = vld [vmem:[#allocation2 + $0x88] sm:$0xf]  ;;  %v1064_v8 = vld [vmem:[#allocation2 + $0x94] sm:$0xf0] }
  0x2b   :  { %447 = vmatpush.bf16.msra.mxu0 %v728_v31  ;;  %v927_v9 = vld [vmem:[#allocation2 + $0x188] sm:$0xf]  ;;  %v948_v10 = vor.u32 %v1098_v2, %v945_v3  ;;  %v1096_v11 = vld [vmem:[#allocation2 + $0x194] sm:$0xf0]  ;;  %v1062_v12 = vld [vmem:[#allocation2 + $0x8c] sm:$0xf]  ;;  %v800_v16 = vor.u32 %v1064_v8, %v799_v7 }
  0x2c   :  { %460 = vmatpush.bf16.msra.mxu1 %v856_v35  ;;  %v801_v13 = vld [vmem:[#allocation2 + $0x98] sm:$0xf0]  ;;  %v1094_v14 = vld [vmem:[#allocation2 + $0x18c] sm:$0xf]  ;;  %v783_v17 = vld [vmem:[#allocation2 + $0x68] sm:$0xf]  ;;  %v928_v18 = vor.u32 %v1096_v11, %v927_v9 }
  0x2d   :  { %473 = vmatpush.bf16.msra.mxu2 %v732_v36  ;;  %v929_v15 = vld [vmem:[#allocation2 + $0x198] sm:$0xf0]  ;;  %v804_v19 = vor.u32 %v1062_v12, %v801_v13  ;;  %v1060_v20 = vld [vmem:[#allocation2 + $0x74] sm:$0xf0]  ;;  %v911_v21 = vld [vmem:[#allocation2 + $0x168] sm:$0xf] }
  0x2e   :  { %486 = vmatpush.bf16.msra.mxu3 %v860_v40  ;;  %448 = vmatmul.bf16.vlgmr.msra.gmra.mxu0 %v1232_v52  ;;  %v1092_v22 = vld [vmem:[#allocation2 + $0x174] sm:$0xf0]  ;;  %v932_v23 = vor.u32 %v1094_v14, %v929_v15  ;;  %v1058_v24 = vld [vmem:[#allocation2 + $0x6c] sm:$0xf]  ;;  %v785_v25 = vld [vmem:[#allocation2 + $0x78] sm:$0xf0]  ;;  %v784_v28 = vor.u32 %v1060_v20, %v783_v17 }
  0x2f   :  { %492 = vmatpush.bf16.msrb.mxu0 %v848_v41  ;;  %461 = vmatmul.bf16.vlgmr.msra.gmra.mxu1 %v1234_v55  ;;  %v1090_v26 = vld [vmem:[#allocation2 + $0x16c] sm:$0xf]  ;;  %v913_v27 = vld [vmem:[#allocation2 + $0x178] sm:$0xf0]  ;;  %v912_v29 = vor.u32 %v1092_v22, %v911_v21  ;;  %v788_v30 = vor.u32 %v1058_v24, %v785_v25  ;;  %v767_v31 = vld [vmem:[#allocation2 + $0x48] sm:$0xf] }
  0x30   :  { %505 = vmatpush.bf16.msrb.mxu1 %v976_v43  ;;  %474 = vmatmul.bf16.vlgmr.msra.gmra.mxu2 %v1232_v52  ;;  %v1056_v32 = vld [vmem:[#allocation2 + $0x54] sm:$0xf0]  ;;  %v895_v33 = vld [vmem:[#allocation2 + $0x148] sm:$0xf]  ;;  %v916_v34 = vor.u32 %v1090_v26, %v913_v27  ;;  %v1054_v36 = vld [vmem:[#allocation2 + $0x4c] sm:$0xf] }
  0x31   :  { %518 = vmatpush.bf16.msrb.mxu2 %v852_v44  ;;  %487 = vmatmul.bf16.vlgmr.msra.gmra.mxu3 %v1234_v55  ;;  %v1088_v35 = vld [vmem:[#allocation2 + $0x154] sm:$0xf0]  ;;  %v769_v37 = vld [vmem:[#allocation2 + $0x58] sm:$0xf0]  ;;  %v1086_v38 = vld [vmem:[#allocation2 + $0x14c] sm:$0xf]  ;;  %v768_v40 = vor.u32 %v1056_v32, %v767_v31 }
  0x32   :  { %531 = vmatpush.bf16.msrb.mxu3 %v980_v48  ;;  %v897_v39 = vld [vmem:[#allocation2 + $0x158] sm:$0xf0]  ;;  %v896_v41 = vor.u32 %v1088_v35, %v895_v33  ;;  %v772_v42 = vor.u32 %v1054_v36, %v769_v37  ;;  %v751_v43 = vld [vmem:[#allocation2 + $0x28] sm:$0xf]  ;;  %v1052_v44 = vld [vmem:[#allocation2 + $0x34] sm:$0xf0] }
  0x33   :  { %493 = vmatpush.bf16.msrb.mxu0 %v832_v56  ;;  %v879_v45 = vld [vmem:[#allocation2 + $0x128] sm:$0xf]  ;;  %v900_v46 = vor.u32 %v1086_v38, %v897_v39  ;;  %v1084_v47 = vld [vmem:[#allocation2 + $0x134] sm:$0xf0]  ;;  %v1050_v48 = vld [vmem:[#allocation2 + $0x2c] sm:$0xf]  ;;  %v752_v53 = vor.u32 %v1052_v44, %v751_v43 }
  0x34   :  { %506 = vmatpush.bf16.msrb.mxu1 %v960_v57  ;;  %v753_v49 = vld [vmem:[#allocation2 + $0x38] sm:$0xf0]  ;;  %v1082_v50 = vld [vmem:[#allocation2 + $0x12c] sm:$0xf]  ;;  %v880_v54 = vor.u32 %v1084_v47, %v879_v45  ;;  %v735_v57 = vld [vmem:[#allocation2 + $0x8] sm:$0xf] }
  0x35   :  { %519 = vmatpush.bf16.msrb.mxu2 %v836_v58  ;;  %v881_v51 = vld [vmem:[#allocation2 + $0x138] sm:$0xf0]  ;;  %v756_v56 = vor.u32 %v1050_v48, %v753_v49  ;;  %v1048_v58 = vld [vmem:[#allocation2 + $0x14] sm:$0xf0]  ;;  %v863_v59 = vld [vmem:[#allocation2 + $0x108] sm:$0xf] }
  0x36   :  { %532 = vmatpush.bf16.msrb.mxu3 %v964_v62  ;;  %v884_v60 = vor.u32 %v1082_v50, %v881_v51  ;;  %v1080_v61 = vld [vmem:[#allocation2 + $0x114] sm:$0xf0]  ;;  %v1046_v62 = vld [vmem:[#allocation2 + $0xc] sm:$0xf]  ;;  %v737_v63 = vld [vmem:[#allocation2 + $0x18] sm:$0xf0]  ;;  %v736_v2 = vor.u32 %v1048_v58, %v735_v57 }
  0x37   :  { %494 = vmatpush.bf16.msrb.mxu0 %v816_v4  ;;  %v1078_v0 = vld [vmem:[#allocation2 + $0x10c] sm:$0xf]  ;;  %v865_v1 = vld [vmem:[#allocation2 + $0x118] sm:$0xf0]  ;;  %v864_v3 = vor.u32 %v1080_v61, %v863_v59  ;;  %v740_v4 = vor.u32 %v1046_v62, %v737_v63  ;;  %v1115_v7 = vld [vmem:[#allocation4 + $0x30] sm:$0xff] }
  0x38   :  { %507 = vmatpush.bf16.msrb.mxu1 %v944_v5  ;;  %v868_v5 = vor.u32 %v1078_v0, %v865_v1  ;;  %v1124_v8 = vld [vmem:[#allocation4 + $0x78] sm:$0xff]  ;;  %v1114_v9 = vld [vmem:[#allocation4 + $0x28] sm:$0xff]  ;;  %v1113_v11 = vld [vmem:[#allocation4 + $0x20] sm:$0xff] }
  0x39   :  { %520 = vmatpush.bf16.msrb.mxu2 %v820_v6  ;;  %v1116_v6 = vld [vmem:[#allocation4 + $0x38] sm:$0xff]  ;;  %v1122_v12 = vld [vmem:[#allocation4 + $0x68] sm:$0xff]  ;;  %v1121_v14 = vld [vmem:[#allocation4 + $0x60] sm:$0xff] }
  0x3a   :  { %533 = vmatpush.bf16.msrb.mxu3 %v948_v10  ;;  %v1123_v10 = vld [vmem:[#allocation4 + $0x70] sm:$0xff]  ;;  %v1112_v13 = vld [vmem:[#allocation4 + $0x18] sm:$0xff]  ;;  %v1118_v22 = vld [vmem:[#allocation4 + $0x48] sm:$0xff] }
  0x3b   :  { %495 = vmatpush.bf16.msrb.mxu0 %v800_v16  ;;  %v1111_v15 = vld [vmem:[#allocation4 + $0x10] sm:$0xff]  ;;  %v1110_v16 = vld [vmem:[#allocation4 + $0x8] sm:$0xff]  ;;  %v1117_v25 = vld [vmem:[#allocation4 + $0x40] sm:$0xff] }
  0x3c   :  { %508 = vmatpush.bf16.msrb.mxu1 %v928_v18  ;;  %v1119_v18 = vld [vmem:[#allocation4 + $0x50] sm:$0xff] }
  0x3d   :  { %521 = vmatpush.bf16.msrb.mxu2 %v804_v19  ;;  %v1109_v19 = vld [vmem:[#allocation4] sm:$0xff] }
  0x3e   :  { %534 = vmatpush.bf16.msrb.mxu3 %v932_v23 }
  0x3f   :  { %496 = vmatpush.bf16.msrb.mxu0 %v784_v28  ;;  %v544_v28 = vld [vmem:[%s1255_s2] sm:$0x3] }
  0x40   :  { %509 = vmatpush.bf16.msrb.mxu1 %v912_v29  ;;  %v547_v38 = vperm.slane %v544_v28, 1 }
  0x41   :  { %522 = vmatpush.bf16.msrb.mxu2 %v788_v30  ;;  %v546_v30 = vperm.slane %v544_v28, 0 }
  0x42   :  { %535 = vmatpush.bf16.msrb.mxu3 %v916_v34 }
  0x43   :  { %497 = vmatpush.bf16.msrb.mxu0 %v768_v40 }
  0x44   :  { %510 = vmatpush.bf16.msrb.mxu1 %v896_v41 }
  0x45   :  { %523 = vmatpush.bf16.msrb.mxu2 %v772_v42 }
  0x46   :  { %536 = vmatpush.bf16.msrb.mxu3 %v900_v46 }
  0x47   :  { %498 = vmatpush.bf16.msrb.mxu0 %v752_v53 }
  0x48   :  { %511 = vmatpush.bf16.msrb.mxu1 %v880_v54 }
  0x49   :  { %524 = vmatpush.bf16.msrb.mxu2 %v756_v56  ;;  %v1131_v56 = vld [vmem:[%s1257_s4] ss:$0 sm:$0xff] }
  0x4a   :  { %537 = vmatpush.bf16.msrb.mxu3 %v884_v60 }
  0x4b   :  { %499 = vmatpush.bf16.msrb.mxu0 %v736_v2 }
  0x4c   :  { %512 = vmatpush.bf16.msrb.mxu1 %v864_v3 }
  0x4d   :  { %525 = vmatpush.bf16.msrb.mxu2 %v740_v4 }
  0x4e   :  { %538 = vmatpush.bf16.msrb.mxu3 %v868_v5  ;;  %500 = vmatmul.bf16.vlgmr.msrb.gmra.mxu0 %v1232_v52 }
  0x4f   :  { %692 = vmatpush.bf16.msra.mxu0 %v1116_v6  ;;  %513 = vmatmul.bf16.vlgmr.msrb.gmra.mxu1 %v1234_v55 }
  0x50   :  { %526 = vmatmul.bf16.vlgmr.msrb.gmra.mxu2 %v1232_v52  ;;  %705 = vmatpush.bf16.msra.mxu1 %v1124_v8  ;;  %v1120_v52 = vld [vmem:[#allocation4 + $0x58] sm:$0xff] }
  0x51   :  { %539 = vmatmul.bf16.vlgmr.msrb.gmra.mxu3 %v1234_v55 }
  0x53   :  { %693 = vmatpush.bf16.msra.mxu0 %v1115_v7 }
  0x54   :  { %706 = vmatpush.bf16.msra.mxu1 %v1123_v10 }
  0x57   :  { %694 = vmatpush.bf16.msra.mxu0 %v1114_v9 }
  0x58   :  { %707 = vmatpush.bf16.msra.mxu1 %v1122_v12 }
  0x5b   :  { %695 = vmatpush.bf16.msra.mxu0 %v1113_v11 }
  0x5c   :  { %708 = vmatpush.bf16.msra.mxu1 %v1121_v14 }
  0x5f   :  { %696 = vmatpush.bf16.msra.mxu0 %v1112_v13 }
  0x60   :  { %709 = vmatpush.bf16.msra.mxu1 %v1120_v52 }
  0x63   :  { %697 = vmatpush.bf16.msra.mxu0 %v1111_v15 }
  0x64   :  { %710 = vmatpush.bf16.msra.mxu1 %v1119_v18 }
  0x67   :  { %698 = vmatpush.bf16.msra.mxu0 %v1110_v16 }
  0x68   :  { %711 = vmatpush.bf16.msra.mxu1 %v1118_v22 }
  0x6b   :  { %699 = vmatpush.bf16.msra.mxu0 %v1109_v19 }
  0x6c   :  { %712 = vmatpush.bf16.msra.mxu1 %v1117_v25 }
  0xab   :  { %v449_v55 = vpop.f32.mrf.mxu0 }
  0xac   :  { %v462_v17 = vpop.f32.mrf.mxu1 }
  0xad   :  { %v463_v29 = vadd.f32 %v462_v17, %v449_v55 }
  0xaf   :  { %v550_v34 = vadd.f32 %v546_v30, %v463_v29 }
  0xb3   :  { %v475_v20 = vpop.f32.mrf.mxu2  ;;  %v451_v23 = vpop.f32.mrf.mxu0 }
  0xb4   :  { %v488_v21 = vpop.f32.mrf.mxu3  ;;  %v464_v24 = vpop.f32.mrf.mxu1 }
  0xb5   :  { %v489_v37 = vadd.f32 %v488_v21, %v475_v20 }
  0xb7   :  { %v551_v46 = vadd.f32 %v547_v38, %v489_v37 }
  0xbb   :  { %v477_v26 = vpop.f32.mrf.mxu2 }
  0xbc   :  { %v490_v27 = vpop.f32.mrf.mxu3 }
  0xcb   :  { %v501_v31 = vpop.f32.mrf.mxu0 }
  0xcc   :  { %v514_v32 = vpop.f32.mrf.mxu1 }
  0xcd   :  { %v515_v33 = vadd.f32 %v514_v32, %v501_v31 }
  0xcf   :  { %v552_v35 = vadd.f32 %v546_v30, %v515_v33 }
  0xd1   :  { %v554_v36 = vmax.f32 %v550_v34, %v552_v35 }
  0xd3   :  { %v527_v39 = vpop.f32.mrf.mxu2  ;;  %v556_v40 = vmax.f32 %v554_v36, 0.0  ;;  %v503_v42 = vpop.f32.mrf.mxu0 }
  0xd4   :  { %v540_v41 = vpop.f32.mrf.mxu3  ;;  %v516_v44 = vpop.f32.mrf.mxu1 }
  0xd5   :  { %v541_v43 = vadd.f32 %v540_v41, %v527_v39  ;;  %v558_v45 = vpack.c.bf16 %v556_v40, %v556_v40 }
  0xd7   :  { %v553_v47 = vadd.f32 %v547_v38, %v541_v43  ;;  %700 = vmatmul.bf16.vlgmr.msra.gmra.mxu0 %v558_v45 }
  0xd9   :  { %v555_v48 = vmax.f32 %v551_v46, %v553_v47 }
  0xdb   :  { %v557_v49 = vmax.f32 %v555_v48, 0.0  ;;  %v529_v50 = vpop.f32.mrf.mxu2 }
  0xdc   :  { %v542_v51 = vpop.f32.mrf.mxu3 }
  0xdd   :  { %v559_v53 = vpack.c.bf16 %v557_v49, %v557_v49 }
  0xdf   :  { %713 = vmatmul.bf16.vlgmr.msra.gmra.mxu1 %v559_v53 }
 0x154   :  { %v701_v54 = vpop.f32.mrf.mxu0 }
 0x155   :  { %v702_v57 = vadd.f32 %v1131_v56, %v701_v54 }
 0x15c   :  { %v714_v58 = vpop.f32.mrf.mxu1  ;;  %v703_v60 = vpop.f32.mrf.mxu0 }
 0x15d   :  { %v715_v59 = vadd.f32 %v714_v58, %v702_v57 }
 0x15f   :  { %718 = vst [vmem:[%s1258_s5] sm:$0xff] %v715_v59 }
 0x164   :  { %v716_v61 = vpop.f32.mrf.mxu1 }
 0x165   :  { %723 = vsyncpa [#allocation3], 1 }
 0x166   :  { %724 = vsyncpa [#allocation5], 1 }

</bundles_post_ra>
